<compile_context>
chip_gen: v6e
topology: v6e:2x2x1
jax: 0.10.0
libtpu: 0.0.40
codegen_flags: <defaults>
</compile_context>

<pallas_src>
import jax
import jax.numpy as jnp
from jax import lax
from jax.experimental import pallas as pl
from jax.experimental.pallas import tpu as pltpu

N, CIN, COUT, K, H, W = 2, 3, 3, 2, 16, 16
OH = OW = 8            # Conv2d(k=2, s=2, p=1, d=2) on 16x16 -> 8x8
PIX = N * OH * OW      # 128 -> exactly one lane-dense vreg row
KIN = CIN * K * K      # 12  -> matmul contraction dim
KOUT = COUT * K * K    # 12  -> output rows


def fused_conv_deconv_kernel(pt_ref, wcomb_t_ref, bcomb_ref, out_ref):
    # pt_ref      : (KIN, PIX)  VMEM  transposed im2col patches of the even-tap grid
    # wcomb_t_ref : (KOUT, KIN) VMEM  fused (conv ∘ conv_transpose) weight, transposed
    # bcomb_ref   : (KOUT, 1)   VMEM  fused bias
    # out_ref     : (KOUT, PIX) VMEM  lane-dense result slab
    out_ref[...] = (
        jnp.dot(wcomb_t_ref[...], pt_ref[...],
                preferred_element_type=jnp.float32)
        + bcomb_ref[...]
    )


@jax.jit
def model_forward(x, wc, bc, wt, bt):
    """x: (N, CIN, 16, 16) NCHW float32 -> (N, COUT, 16, 16) NCHW float32."""
    # Even taps of the pad-1/stride-2/dilation-2 conv: a zero top row / left
    # column plus x[:, :, 1::2, 1::2]  ->  (N, CIN, 9, 9). No full padded array.
    xe = jnp.pad(x[:, :, 1::2, 1::2], ((0, 0), (0, 0), (1, 0), (1, 0)))

    # Transposed im2col: Pt[ci*4 + kh*2 + kw, n*64 + oh*8 + ow] = xe[n, ci, oh+kh, ow+kw]
    wins = jnp.stack(
        [xe[:, :, kh:kh + OH, kw:kw + OW] for kh in range(K) for kw in range(K)],
        axis=2)                                             # (N, CIN, K*K, OH, OW)
    pt = wins.transpose(1, 2, 0, 3, 4).reshape(KIN, PIX)    # (12, 128)

    # Fused weights / bias:
    #   Wcomb[(ci,kh2,kw2),(co,kh,kw)] = sum_m wc[m,ci,kh2,kw2] * wt[m,co,kh,kw]
    #   bcomb[(co,kh,kw)]              = sum_m bc[m] * wt[m,co,kh,kw] + bt[co]
    wcomb_t = jnp.einsum('mikl,mojp->ojpikl', wc, wt).reshape(KOUT, KIN)
    bcomb = (jnp.einsum('m,mojp->ojp', bc, wt) + bt[:, None, None]).reshape(KOUT, 1)

    out_slab = pl.pallas_call(
        fused_conv_deconv_kernel,
        out_shape=jax.ShapeDtypeStruct((KOUT, PIX), jnp.float32),
        in_specs=[
            pl.BlockSpec(memory_space=pltpu.MemorySpace.VMEM),
            pl.BlockSpec(memory_space=pltpu.MemorySpace.VMEM),
            pl.BlockSpec(memory_space=pltpu.MemorySpace.VMEM),
        ],
        out_specs=pl.BlockSpec(memory_space=pltpu.MemorySpace.VMEM),
        cost_estimate=pl.CostEstimate(
            flops=2 * KOUT * KIN * PIX,
            transcendentals=0,
            bytes_accessed=4 * (KIN * PIX + KOUT * KIN + KOUT + KOUT * PIX)),
    )(pt, wcomb_t, bcomb)

    # (co, kh, kw, n, oh, ow) -> (n, co, oh, kh, ow, kw) -> NCHW 16x16 interleave
    return (out_slab.reshape(COUT, K, K, N, OH, OW)
            .transpose(3, 0, 4, 1, 5, 2)
            .reshape(N, COUT, 2 * OH, 2 * OW))


def reference(x, wc, bc, wt, bt):
    v3 = lax.conv_general_dilated(
        x, wc, window_strides=(2, 2), padding=((1, 1), (1, 1)),
        rhs_dilation=(2, 2), dimension_numbers=("NCHW", "OIHW", "NCHW"),
        precision=lax.Precision.HIGHEST) + bc.reshape(1, -1, 1, 1)
    w_eq = jnp.flip(jnp.transpose(wt, (1, 0, 2, 3)), axis=(2, 3))
    v7 = lax.conv_general_dilated(
        v3, w_eq, window_strides=(1, 1), padding=((1, 1), (1, 1)),
        lhs_dilation=(2, 2), dimension_numbers=("NCHW", "OIHW", "NCHW"),
        precision=lax.Precision.HIGHEST) + bt.reshape(1, -1, 1, 1)
    return v7


if __name__ == "__main__":
    key = jax.random.PRNGKey(0)
    kx, kwc, kbc, kwt, kbt = jax.random.split(key, 5)

    x = jax.random.normal(kx, (N, CIN, H, W), jnp.float32)
    # Conv2d(3, 3, 2, stride=2, padding=1, dilation=2): weight (O, I, 2, 2)
    wc = jax.random.normal(kwc, (COUT, CIN, K, K), jnp.float32) * 0.2
    bc = jax.random.normal(kbc, (COUT,), jnp.float32) * 0.1
    # ConvTranspose2d(3, 3, 2, stride=2): weight (I, O, 2, 2)
    wt = jax.random.normal(kwt, (CIN, COUT, K, K), jnp.float32) * 0.2
    bt = jax.random.normal(kbt, (COUT,), jnp.float32) * 0.1

    out = jax.block_until_ready(model_forward(x, wc, bc, wt, bt))
    ref = jax.block_until_ready(reference(x, wc, bc, wt, bt))

    assert out.shape == (N, COUT, 16, 16), out.shape
    assert jnp.allclose(out, ref, atol=1e-4, rtol=1e-4), float(jnp.abs(out - ref).max())
    print("KERNEL_OK")
</pallas_src>

<mosaic_0001>
module attributes {stable_mosaic.version = 11 : i64} {
  func.func @fused_conv_deconv_kernel(%arg0: memref<12x128xf32, #tpu.memory_space<vmem>>, %arg1: memref<12x12xf32, #tpu.memory_space<vmem>>, %arg2: memref<12x1xf32, #tpu.memory_space<vmem>>, %arg3: memref<12x128xf32, #tpu.memory_space<vmem>>) attributes {dimension_semantics = [], scalar_prefetch = 0 : i64, scratch_operands = 0 : i64, tpu.core_type = #tpu.core_type<tc>} {
    %c0 = arith.constant 0 : index
    %c0_0 = arith.constant 0 : index
    %0 = vector.load %arg1[%c0, %c0_0] : memref<12x12xf32, #tpu.memory_space<vmem>>, vector<12x12xf32>
    %c0_1 = arith.constant 0 : index
    %c0_2 = arith.constant 0 : index
    %1 = vector.load %arg0[%c0_1, %c0_2] : memref<12x128xf32, #tpu.memory_space<vmem>>, vector<12x128xf32>
    %cst = arith.constant dense<0.000000e+00> : vector<12x128xf32>
    %2 = tpu.matmul %0, %1, %cst {dimension_numbers = #tpu.dot_dimension_numbers<[1], [0], [0], [1], [0, 0, 1, 1], [], []>} : vector<12x12xf32>, vector<12x128xf32>, vector<12x128xf32> -> vector<12x128xf32>
    %c0_3 = arith.constant 0 : index
    %c0_4 = arith.constant 0 : index
    %3 = vector.load %arg2[%c0_3, %c0_4] : memref<12x1xf32, #tpu.memory_space<vmem>>, vector<12x1xf32>
    %4 = vector.broadcast %3 : vector<12x1xf32> to vector<12x128xf32>
    %5 = arith.addf %2, %4 : vector<12x128xf32>
    %c0_5 = arith.constant 0 : index
    %c0_6 = arith.constant 0 : index
    %6 = vector.load %arg3[%c0_5, %c0_6] : memref<12x128xf32, #tpu.memory_space<vmem>>, vector<12x128xf32>
    tpu.vector_store %arg3[%c0_5, %c0_6], %5 {strides = array<i32>} : memref<12x128xf32, #tpu.memory_space<vmem>>, vector<12x128xf32>,
    return
  }
}

</mosaic_0001>

<bundles_post_ra>
// kernel: model_forward.1
= control target key start
LH: loop header
LB: loop body
LE: loop exit
PB: predicated region body
PF: predicated region fallthrough
CT: control target
= control target key end

     0   :  { %vm37_vm0 = vcmask 1043456   ;;  %vm30_vm1 = vcmask 97280   ;;  %v138_v3 = vmov 0   ;;  %s185_s0 = inlined_call_operand.vmem [shape: f32[12,128], index: 0, kind: input, shape index: {}]   ;;  %s186_s1 = inlined_call_operand.vmem [shape: f32[12,12], index: 1, kind: input, shape index: {}]   ;;  %s187_s2 = inlined_call_operand.vmem [shape: f32[12,1], index: 2, kind: input, shape index: {}]   ;;  %s188_s3 = inlined_call_operand.vmem [shape: f32[12,128], index: 3, kind: output, shape index: {}]  }
   0x1   :  { %v17_v0 = vld [vmem:[%s185_s0 + $0x8] sm:$0xf]  ;;  %v16_v1 = vld [vmem:[%s185_s0] sm:$0xff]  ;;  %137 = vset.pattern.permute.xlu0 %v138_v3 }
   0x2   :  { %v14_v2 = vld [vmem:[%s186_s1] sm:$0xff]  ;;  %129 = vmatprep.subr.msk.mxu0 %vm37_vm0, %v17_v0  ;;  %v15_v5 = vld [vmem:[%s186_s1 + $0x8] sm:$0xf] }
   0x3   :  { %133 = vmatprep.mubr.msk.f32.mxu0 %vm30_vm1, %v14_v2  ;;  %v18_v4 = vld [vmem:[%s187_s2] sm:$0xff]  ;;  %130 = vmatpush3.msk.msra.mxu0 %vm37_vm0, %v17_v0  ;;  %v19_v6 = vld [vmem:[%s187_s2 + $0x8] sm:$0xf] }
   0x4   :  { %22 = vperm.xlu0 %137, %v18_v4   ;;  %131 = vmatprep.subr.mxu0 %v16_v1 }
   0x5   :  { %132 = vmatpush3.msra.mxu0 %v16_v1 }
   0x6   :  { %134 = vmatmul.mubr.msk.f32.vlgmr.msra.gmra.mxu0 %vm30_vm1, %v15_v5 }
   0x8   :  { %27 = vperm.xlu0 %137, %v19_v6  }
  0x7f   :  { %v23_v7 = vpop.permute.xlu0 %22 }
  0x83   :  { %v28_v8 = vpop.permute.xlu0 %27 }
  0xc6   :  { %v135_v9 = vpop.f32.mrf.mxu0 }
  0xc7   :  { %v113_v10 = vadd.f32 %v135_v9, %v28_v8 }
  0xc8   :  { %v107_v11 = vpop.f32.mrf.mxu0 }
  0xc9   :  { %117 = vst [vmem:[%s188_s3 + $0x8] sm:$0xf] %v113_v10  ;;  %v108_v12 = vadd.f32 %v107_v11, %v23_v7 }
  0xcb   :  { %116 = vst [vmem:[%s188_s3] sm:$0xff] %v108_v12 }

</bundles_post_ra>
